<compile_context>
chip_gen: v7x
topology: tpu7x:2x2x1
jax: 0.10.0
libtpu: 0.0.40
codegen_flags: <defaults>
</compile_context>

<pallas_src>
import jax
import jax.numpy as jnp
from jax.experimental import pallas as pl
from jax.experimental.pallas import tpu as pltpu


def dnn_kernel(x_ref,
               w1_ref, b1_ref,
               w2_ref, b2_ref,
               w3_ref, b3_ref,
               w4_ref, b4_ref,
               o_ref):
    """Fused 4-layer MLP on one (batch_tile, in_dim) block.

    x_ref : (batch_tile, in_dim) float32
    wN    : (in, out)            float32
    bN    : (1, out)             float32
    o_ref : (batch_tile, 8)      float32
    """
    y = x_ref[...]
    y = jnp.maximum(
        jnp.dot(y, w1_ref[...], preferred_element_type=jnp.float32) + b1_ref[...], 0.0)
    y = jnp.maximum(
        jnp.dot(y, w2_ref[...], preferred_element_type=jnp.float32) + b2_ref[...], 0.0)
    y = jnp.maximum(
        jnp.dot(y, w3_ref[...], preferred_element_type=jnp.float32) + b3_ref[...], 0.0)
    y = jnp.maximum(
        jnp.dot(y, w4_ref[...], preferred_element_type=jnp.float32) + b4_ref[...], 0.0)
    o_ref[...] = y.astype(o_ref.dtype)


def _round_up(x, m):
    return ((x + m - 1) // m) * m


def dnn_forward(x, params, *, batch_tile=1024):
    """x: (B, 2*dim) float32. params: wN (in, out) f32, bN (1, out) f32.

    Returns (B, 8) float32, matching the PyTorch module's forward pass.
    """
    B, in_dim = x.shape
    out_dim = params["w4"].shape[1]

    # Tile: large by default (amortizes the per-grid-step pipeline overhead),
    # capped at the sublane-rounded batch so small batches use one exact tile.
    bt = min(_round_up(batch_tile, 8), _round_up(B, 8))
    n_tiles = pl.cdiv(B, bt)
    b_pad = n_tiles * bt

    # Only the last partial tile (if any) is zero-padded; at most bt-1 rows.
    x_in = x if b_pad == B else jnp.pad(x, ((0, b_pad - B), (0, 0)))

    ws = [params[f"w{i}"].astype(jnp.float32) for i in range(1, 5)]              # (in, out)
    bs = [params[f"b{i}"].reshape(1, -1).astype(jnp.float32) for i in range(1, 5)]  # (1, out)

    rep = lambda i: (0, 0)  # weights / biases VMEM-resident across all batch tiles
    wb_specs = []
    for w, b in zip(ws, bs):
        wb_specs.append(pl.BlockSpec(w.shape, rep))
        wb_specs.append(pl.BlockSpec(b.shape, rep))

    out = pl.pallas_call(
        dnn_kernel,
        out_shape=jax.ShapeDtypeStruct((b_pad, out_dim), jnp.float32),
        grid_spec=pltpu.PrefetchScalarGridSpec(
            num_scalar_prefetch=0,
            grid=(n_tiles,),
            in_specs=[pl.BlockSpec((bt, in_dim), lambda i: (i, 0))] + wb_specs,
            out_specs=pl.BlockSpec((bt, out_dim), lambda i: (i, 0)),
        ),
        compiler_params=pltpu.CompilerParams(
            dimension_semantics=("parallel",)),
    )(x_in, ws[0], bs[0], ws[1], bs[1], ws[2], bs[2], ws[3], bs[3])

    return out[:B]


def init_params(key, dim):
    """Deterministic init mimicking PyTorch nn.Linear default U[-1/sqrt(fan_in), ..]."""
    sizes = [(2 * dim, 32), (32, 16), (16, 8), (8, 8)]
    params = {}
    keys = jax.random.split(key, 2 * len(sizes))
    for idx, (fan_in, fan_out) in enumerate(sizes):
        bound = 1.0 / (fan_in ** 0.5)
        w = jax.random.uniform(keys[2 * idx], (fan_in, fan_out),
                               minval=-bound, maxval=bound, dtype=jnp.float32)
        b = jax.random.uniform(keys[2 * idx + 1], (1, fan_out),
                               minval=-bound, maxval=bound, dtype=jnp.float32)
        params[f"w{idx + 1}"] = w
        params[f"b{idx + 1}"] = b
    return params


def dnn_reference(x, params):
    """Pure-JAX float32 reference matching the PyTorch module."""
    y = x
    for i in range(1, 5):
        y = jnp.maximum(y @ params[f"w{i}"] + params[f"b{i}"], 0.0)
    return y


if __name__ == "__main__":
    key = jax.random.PRNGKey(0)
    k_param, k_x = jax.random.split(key)

    dim = 16          # input is a concat of two dim-wide embeddings -> 2*dim = 32
    batch = 8

    params = init_params(k_param, dim)
    x = jax.random.normal(k_x, (batch, 2 * dim), dtype=jnp.float32)

    out = jax.block_until_ready(dnn_forward(x, params))
    ref = dnn_reference(x, params)

    assert out.shape == (batch, 8)
    # Tolerance covers the (possible) bf16-input MXU pass used by default f32
    # matmul precision on TPU for either the kernel or the XLA reference.
    assert jnp.allclose(out, ref, atol=1e-2, rtol=1e-2), "mismatch vs reference"

    print("KERNEL_OK")
</pallas_src>

<mosaic_0001>
module attributes {stable_mosaic.version = 11 : i64} {
  func.func @dnn_kernel(%arg0: i32, %arg1: memref<8x32xf32, #tpu.memory_space<vmem>>, %arg2: memref<32x32xf32, #tpu.memory_space<vmem>>, %arg3: memref<1x32xf32, #tpu.memory_space<vmem>>, %arg4: memref<32x16xf32, #tpu.memory_space<vmem>>, %arg5: memref<1x16xf32, #tpu.memory_space<vmem>>, %arg6: memref<16x8xf32, #tpu.memory_space<vmem>>, %arg7: memref<1x8xf32, #tpu.memory_space<vmem>>, %arg8: memref<8x8xf32, #tpu.memory_space<vmem>>, %arg9: memref<1x8xf32, #tpu.memory_space<vmem>>, %arg10: memref<8x8xf32, #tpu.memory_space<vmem>>) attributes {dimension_semantics = [#tpu.dimension_semantics<parallel>], iteration_bounds = array<i64: 1>, scalar_prefetch = 0 : i64, scratch_operands = 0 : i64, tpu.core_type = #tpu.core_type<tc>, window_params = [{transform_indices = @transform_0, window_bounds = array<i64: 8, 32>}, {pipeline_mode = #tpu.pipeline_mode<synchronous>, transform_indices = @transform_1, window_bounds = array<i64: 32, 32>}, {pipeline_mode = #tpu.pipeline_mode<synchronous>, transform_indices = @transform_2, window_bounds = array<i64: 1, 32>}, {pipeline_mode = #tpu.pipeline_mode<synchronous>, transform_indices = @transform_3, window_bounds = array<i64: 32, 16>}, {pipeline_mode = #tpu.pipeline_mode<synchronous>, transform_indices = @transform_4, window_bounds = array<i64: 1, 16>}, {pipeline_mode = #tpu.pipeline_mode<synchronous>, transform_indices = @transform_5, window_bounds = array<i64: 16, 8>}, {pipeline_mode = #tpu.pipeline_mode<synchronous>, transform_indices = @transform_6, window_bounds = array<i64: 1, 8>}, {pipeline_mode = #tpu.pipeline_mode<synchronous>, transform_indices = @transform_7, window_bounds = array<i64: 8, 8>}, {pipeline_mode = #tpu.pipeline_mode<synchronous>, transform_indices = @transform_8, window_bounds = array<i64: 1, 8>}, {transform_indices = @transform_9, window_bounds = array<i64: 8, 8>}]} {
    %c0 = arith.constant 0 : index
    %c0_0 = arith.constant 0 : index
    %0 = vector.load %arg1[%c0, %c0_0] : memref<8x32xf32, #tpu.memory_space<vmem>>, vector<8x32xf32>
    %c0_1 = arith.constant 0 : index
    %c0_2 = arith.constant 0 : index
    %1 = vector.load %arg2[%c0_1, %c0_2] : memref<32x32xf32, #tpu.memory_space<vmem>>, vector<32x32xf32>
    %cst = arith.constant dense<0.000000e+00> : vector<8x32xf32>
    %2 = tpu.matmul %0, %1, %cst {dimension_numbers = #tpu.dot_dimension_numbers<[1], [0], [0], [1], [0, 0, 1, 1], [], []>} : vector<8x32xf32>, vector<32x32xf32>, vector<8x32xf32> -> vector<8x32xf32>
    %c0_3 = arith.constant 0 : index
    %c0_4 = arith.constant 0 : index
    %3 = vector.load %arg3[%c0_3, %c0_4] : memref<1x32xf32, #tpu.memory_space<vmem>>, vector<1x32xf32>
    %4 = vector.broadcast %3 : vector<1x32xf32> to vector<8x32xf32>
    %5 = arith.addf %2, %4 : vector<8x32xf32>
    %cst_5 = arith.constant 0.000000e+00 : f32
    %6 = vector.broadcast %cst_5 : f32 to vector<8x32xf32>
    %7 = arith.maximumf %5, %6 : vector<8x32xf32>
    %c0_6 = arith.constant 0 : index
    %c0_7 = arith.constant 0 : index
    %8 = vector.load %arg4[%c0_6, %c0_7] : memref<32x16xf32, #tpu.memory_space<vmem>>, vector<32x16xf32>
    %cst_8 = arith.constant dense<0.000000e+00> : vector<8x16xf32>
    %9 = tpu.matmul %7, %8, %cst_8 {dimension_numbers = #tpu.dot_dimension_numbers<[1], [0], [0], [1], [0, 0, 1, 1], [], []>} : vector<8x32xf32>, vector<32x16xf32>, vector<8x16xf32> -> vector<8x16xf32>
    %c0_9 = arith.constant 0 : index
    %c0_10 = arith.constant 0 : index
    %10 = vector.load %arg5[%c0_9, %c0_10] : memref<1x16xf32, #tpu.memory_space<vmem>>, vector<1x16xf32>
    %11 = vector.broadcast %10 : vector<1x16xf32> to vector<8x16xf32>
    %12 = arith.addf %9, %11 : vector<8x16xf32>
    %cst_11 = arith.constant 0.000000e+00 : f32
    %13 = vector.broadcast %cst_11 : f32 to vector<8x16xf32>
    %14 = arith.maximumf %12, %13 : vector<8x16xf32>
    %c0_12 = arith.constant 0 : index
    %c0_13 = arith.constant 0 : index
    %15 = vector.load %arg6[%c0_12, %c0_13] : memref<16x8xf32, #tpu.memory_space<vmem>>, vector<16x8xf32>
    %cst_14 = arith.constant dense<0.000000e+00> : vector<8x8xf32>
    %16 = tpu.matmul %14, %15, %cst_14 {dimension_numbers = #tpu.dot_dimension_numbers<[1], [0], [0], [1], [0, 0, 1, 1], [], []>} : vector<8x16xf32>, vector<16x8xf32>, vector<8x8xf32> -> vector<8x8xf32>
    %c0_15 = arith.constant 0 : index
    %c0_16 = arith.constant 0 : index
    %17 = vector.load %arg7[%c0_15, %c0_16] : memref<1x8xf32, #tpu.memory_space<vmem>>, vector<1x8xf32>
    %18 = vector.broadcast %17 : vector<1x8xf32> to vector<8x8xf32>
    %19 = arith.addf %16, %18 : vector<8x8xf32>
    %cst_17 = arith.constant 0.000000e+00 : f32
    %20 = vector.broadcast %cst_17 : f32 to vector<8x8xf32>
    %21 = arith.maximumf %19, %20 : vector<8x8xf32>
    %c0_18 = arith.constant 0 : index
    %c0_19 = arith.constant 0 : index
    %22 = vector.load %arg8[%c0_18, %c0_19] : memref<8x8xf32, #tpu.memory_space<vmem>>, vector<8x8xf32>
    %cst_20 = arith.constant dense<0.000000e+00> : vector<8x8xf32>
    %23 = tpu.matmul %21, %22, %cst_20 {dimension_numbers = #tpu.dot_dimension_numbers<[1], [0], [0], [1], [0, 0, 1, 1], [], []>} : vector<8x8xf32>, vector<8x8xf32>, vector<8x8xf32> -> vector<8x8xf32>
    %c0_21 = arith.constant 0 : index
    %c0_22 = arith.constant 0 : index
    %24 = vector.load %arg9[%c0_21, %c0_22] : memref<1x8xf32, #tpu.memory_space<vmem>>, vector<1x8xf32>
    %25 = vector.broadcast %24 : vector<1x8xf32> to vector<8x8xf32>
    %26 = arith.addf %23, %25 : vector<8x8xf32>
    %cst_23 = arith.constant 0.000000e+00 : f32
    %27 = vector.broadcast %cst_23 : f32 to vector<8x8xf32>
    %28 = arith.maximumf %26, %27 : vector<8x8xf32>
    %c0_24 = arith.constant 0 : index
    %c0_25 = arith.constant 0 : index
    %29 = vector.load %arg10[%c0_24, %c0_25] : memref<8x8xf32, #tpu.memory_space<vmem>>, vector<8x8xf32>
    tpu.vector_store %arg10[%c0_24, %c0_25], %28 {strides = array<i32>} : memref<8x8xf32, #tpu.memory_space<vmem>>, vector<8x8xf32>,
    return
  }
  func.func @transform_0(%arg0: i32) -> (i32, i32) {
    %c0_i32 = arith.constant 0 : i32
    %c0_i32_0 = arith.constant 0 : i32
    return %arg0, %c0_i32 : i32, i32
  }
  func.func @transform_1(%arg0: i32) -> (i32, i32) {
    %c0_i32 = arith.constant 0 : i32
    %c0_i32_0 = arith.constant 0 : i32
    %c0_i32_1 = arith.constant 0 : i32
    return %c0_i32, %c0_i32_0 : i32, i32
  }
  func.func @transform_2(%arg0: i32) -> (i32, i32) {
    %c0_i32 = arith.constant 0 : i32
    %c0_i32_0 = arith.constant 0 : i32
    %c0_i32_1 = arith.constant 0 : i32
    return %c0_i32, %c0_i32_0 : i32, i32
  }
  func.func @transform_3(%arg0: i32) -> (i32, i32) {
    %c0_i32 = arith.constant 0 : i32
    %c0_i32_0 = arith.constant 0 : i32
    %c0_i32_1 = arith.constant 0 : i32
    return %c0_i32, %c0_i32_0 : i32, i32
  }
  func.func @transform_4(%arg0: i32) -> (i32, i32) {
    %c0_i32 = arith.constant 0 : i32
    %c0_i32_0 = arith.constant 0 : i32
    %c0_i32_1 = arith.constant 0 : i32
    return %c0_i32, %c0_i32_0 : i32, i32
  }
  func.func @transform_5(%arg0: i32) -> (i32, i32) {
    %c0_i32 = arith.constant 0 : i32
    %c0_i32_0 = arith.constant 0 : i32
    %c0_i32_1 = arith.constant 0 : i32
    return %c0_i32, %c0_i32_0 : i32, i32
  }
  func.func @transform_6(%arg0: i32) -> (i32, i32) {
    %c0_i32 = arith.constant 0 : i32
    %c0_i32_0 = arith.constant 0 : i32
    %c0_i32_1 = arith.constant 0 : i32
    return %c0_i32, %c0_i32_0 : i32, i32
  }
  func.func @transform_7(%arg0: i32) -> (i32, i32) {
    %c0_i32 = arith.constant 0 : i32
    %c0_i32_0 = arith.constant 0 : i32
    %c0_i32_1 = arith.constant 0 : i32
    return %c0_i32, %c0_i32_0 : i32, i32
  }
  func.func @transform_8(%arg0: i32) -> (i32, i32) {
    %c0_i32 = arith.constant 0 : i32
    %c0_i32_0 = arith.constant 0 : i32
    %c0_i32_1 = arith.constant 0 : i32
    return %c0_i32, %c0_i32_0 : i32, i32
  }
  func.func @transform_9(%arg0: i32) -> (i32, i32) {
    %c0_i32 = arith.constant 0 : i32
    %c0_i32_0 = arith.constant 0 : i32
    return %arg0, %c0_i32 : i32, i32
  }
}

</mosaic_0001>

<bundles_post_ra>
// kernel: tpu_custom_call.1
= control target key start
LH: loop header
LB: loop body
LE: loop exit
PB: predicated region body
PF: predicated region fallthrough
CT: control target
= control target key end

     0   :  { %v487_v3 = vmov 0.0|0.0   ;;  %vm488_vm0 = vmmov 0   ;;  %v489_v6 = vmov 0.0   ;;  %s605_s0 = inlined_call_operand.vmem [shape: f32[8,32], index: 0, kind: input, shape index: {}]   ;;  %s606_s1 = inlined_call_operand.vmem [shape: f32[32,32], index: 1, kind: input, shape index: {}]   ;;  %s607_s2 = inlined_call_operand.vmem [shape: f32[1,32], index: 2, kind: input, shape index: {}]   ;;  %s608_s3 = inlined_call_operand.vmem [shape: f32[32,16], index: 3, kind: input, shape index: {}]   ;;  %s609_s4 = inlined_call_operand.vmem [shape: f32[1,16], index: 4, kind: input, shape index: {}]   ;;  %s610_s5 = inlined_call_operand.vmem [shape: f32[16,8], index: 5, kind: input, shape index: {}]   ;;  %s611_s6 = inlined_call_operand.vmem [shape: f32[1,8], index: 6, kind: input, shape index: {}]   ;;  %s612_s7 = inlined_call_operand.vmem [shape: f32[8,8], index: 7, kind: input, shape index: {}]   ;;  %s613_s8 = inlined_call_operand.vmem [shape: f32[1,8], index: 8, kind: input, shape index: {}]   ;;  %s614_s9 = inlined_call_operand.hbm [shape: f32[8,8], index: 9, kind: output, shape index: {}]  }
   0x1   :  { %v34_v0 = vld [vmem:[%s606_s1] sm:$0xff]  ;;  %v35_v1 = vld [vmem:[%s606_s1 + $0x8] sm:$0xff]  ;;  %v36_v2 = vld [vmem:[%s606_s1 + $0x10] sm:$0xff]  ;;  %444 = vmatprep.subr.bf16.mxu0 %v487_v3  ;;  %418 = vmatprep.mubr.msk.f32.mxu0 %vm488_vm0, %v489_v6 }
   0x2   :  { %v445_v4 = vpack.c.bf16 %v35_v1, %v34_v0  ;;  %v37_v5 = vld [vmem:[%s606_s1 + $0x18] sm:$0xff]  ;;  %v120_v7 = vld [vmem:[%s608_s3] sm:$0xff]  ;;  %450 = vmatprep.subr.bf16.mxu1 %v487_v3  ;;  %v121_v8 = vld [vmem:[%s608_s3 + $0x8] sm:$0xff]  ;;  %429 = vmatprep.mubr.msk.f32.mxu1 %vm488_vm0, %v489_v6 }
   0x3   :  { %14 = vsyncpa [#allocation3], 0  ;;  %v448_v9 = vpack.c.bf16 %v37_v5, %v36_v2  ;;  %v451_v10 = vpack.c.bf16 %v121_v8, %v120_v7  ;;  %v33_v11 = vld [vmem:[%s605_s0] sm:$0xff]  ;;  %vm45_vm1 = vcmask 261120   ;;  %v122_v12 = vld [vmem:[%s608_s3 + $0x10] sm:$0xff]  ;;  %vm214_vm2 = vcmask 130048  }
   0x4   :  { %446 = vmatpush3.bf16.msra.mxu0 %v445_v4  ;;  %v123_v13 = vld [vmem:[%s608_s3 + $0x18] sm:$0xff]  ;;  %v387_v15 = vld [vmem:[%s607_s2] ss:$0 sm:$0xff]  ;;  %v206_v21 = vld [vmem:[%s610_s5 + $0x8] sm:$0xff]  ;;  %vm297_vm3 = vcmask 64512   ;;  %s490_s14 = smov [#allocation2]  }
   0x5   :  { %447 = vmatprep.subr.bf16.mxu0 %v487_v3  ;;  %452 = vmatpush3.bf16.msra.mxu1 %v451_v10  ;;  %v454_v14 = vpack.c.bf16 %v123_v13, %v122_v12  ;;  %v205_v20 = vld [vmem:[%s610_s5] sm:$0xff]  ;;  %s379_s15 = sshll.u32 %s490_s14, 4  ;;  %s380_s15 = int_to_ptr.vmem [resolvable:$true] %s379_s15 }
   0x6   :  { %453 = vmatprep.subr.bf16.mxu1 %v487_v3  ;;  %v457_v22 = vpack.c.bf16 %v206_v21, %v205_v20  ;;  %v389_v23 = vld [vmem:[%s609_s4] ss:$0 sm:$0xff]  ;;  %p468_p1 = scmp.lt.s32.totalorder %s380_s15, %s380_s15 }
   0x7   :  { %v289_v28 = vld [vmem:[%s612_s7] sm:$0xff]  ;;  %s463_s7 = scalar_lea.vmem %s380_s15, 128 }
   0x8   :  { %449 = vmatpush3.bf16.msra.mxu0 %v448_v9  ;;  %v391_v29 = vld [vmem:[%s611_s6] ss:$0 sm:$0xff]  ;;  %p464_p0 = scmp.ne.s32.totalorder %s380_s15, %s463_s7  ;;  %p469_p2 = scmp.lt.s32.totalorder %s463_s7, %s463_s7 }
   0x9   :  { %456 = vmatprep.subr.bf16.mxu0 %v487_v3  ;;  %455 = vmatpush3.bf16.msra.mxu1 %v454_v14  ;;  %v393_v34 = vld [vmem:[%s613_s8] ss:$0 sm:$0xff] }
   0xa   :  { %439 = vmatprep.subr.mxu1 %v489_v6  ;;  %p470_p3 = por %p469_p2, %p468_p1 }
   0xb   :  { %419 = vmatmul.mubr.msk.f32.vlgmr.msra.gmra.mrb[0].mxu0 %vm45_vm1, %v33_v11 }
   0xc   :  { %436 = vmatprep.mubr.msk.f32.mxu0 %vm488_vm0, %v489_v6  ;;  %458 = vmatpush3.bf16.msra.mxu0 %v457_v22  ;;  %p471_p4 = pnand %p470_p3, %p464_p0 }
  0xde   :  { %v115_v16 = vpop.f32.mrb[0].mxu0 }
  0xdf   :  { %v116_v17 = vadd.f32 %v387_v15, %v115_v16  ;;  %v420_v18 = vpop.f32.mrb[1].mxu0 }
  0xe1   :  { %v119_v19 = vmax.f32 %v116_v17, 0.0 }
  0xe3   :  { %430 = vmatmul.mubr.msk.f32.vlgmr.msra.gmra.mrb[0].mxu1 %vm45_vm1, %v119_v19 }
  0xe4   :  { %441 = vmatprep.mubr.msk.f32.mxu1 %vm488_vm0, %v489_v6  ;;  %440 = vmatpush3.msra.mxu1 %v289_v28 }
 0x1b6   :  { %v200_v24 = vpop.f32.mrb[0].mxu1 }
 0x1b7   :  { %v201_v25 = vadd.f32 %v389_v23, %v200_v24  ;;  %v431_v26 = vpop.f32.mrb[1].mxu1 }
 0x1b9   :  { %v204_v27 = vmax.f32 %v201_v25, 0.0 }
 0x1bb   :  { %437 = vmatmul.mubr.msk.f32.vlgmr.msra.gmra.mrb[2].mxu0 %vm214_vm2, %v204_v27 }
 0x28e   :  { %v284_v30 = vpop.f32.mrb[2].mxu0 }
 0x28f   :  { %v285_v31 = vadd.f32 %v391_v29, %v284_v30  ;;  %v438_v32 = vpop.f32.mrb[3].mxu0 }
 0x291   :  { %v288_v33 = vmax.f32 %v285_v31, 0.0 }
 0x293   :  { %442 = vmatmul.mubr.msk.f32.vlgmr.msra.gmra.mrb[2].mxu1 %vm297_vm3, %v288_v33 }
 0x366   :  { %v367_v35 = vpop.f32.mrb[2].mxu1 }
 0x367   :  { %v368_v36 = vadd.f32 %v393_v34, %v367_v35  ;;  %v443_v37 = vpop.f32.mrb[3].mxu1 }
 0x369   :  { %v371_v38 = vmax.f32 %v368_v36, 0.0 }
 0x36b   :  { %372 = vst.msk [vmem:[#allocation2] sm:$0xff] %vm297_vm3, %v371_v38 }
 0x36c   :  { %474 = shalt.err (!%p471_p4)
}
 0x36d   :  { %s475_s17 = scalar_lea.hbm %s614_s9, 128 }
 0x36e   :  { %p476_p5 = scmp.ne.s32.totalorder %s614_s9, %s475_s17  ;;  %p479_p6 = scmp.lt.u32.totalorder %s475_s17, %s614_s9 }
 0x370   :  { %p481_p7 = pnand %p479_p6, %p476_p5 }
 0x372   :  { %484 = shalt.err (!%p481_p7)
}
 0x373   :  { %382 = dma.vmem_to_hbm [thread:$0]  %s380_s15, 128, %s614_s9, [#allocation3]  }
 0x374   :  { %485 = dma.done.wait [#allocation3], 128  }
 0x375   :  { %486 = vsyncadd [#allocation3], 4294967168 }
 0x376   :  { %386 = vsyncpa [#allocation3], 1 }

</bundles_post_ra>
